<compile_context>
chip_gen: v6e
topology: v6e:2x2x1
jax: 0.10.0
libtpu: 0.0.40
codegen_flags: <defaults>
</compile_context>

<pallas_src>
import functools

import jax
import jax.numpy as jnp
from jax import lax
from jax.experimental import pallas as pl
from jax.experimental.pallas import tpu as pltpu  # noqa: F401  (TPU backend)

# ------------------------------ problem sizes --------------------------------

BATCH = 2
FEAT = 16
MAX_LEN = 8
VOCAB = 32          # MAX_LEN * VOCAB = 256 -> lane-dense logits
N_OFFSET = 3


# ------------------------------ Pallas kernel --------------------------------


def _fused_sender_plus_n_kernel(x_ref, w_ref, b_ref,
                                sym_ref, lp_ref, ent_ref,
                                *, n, max_len, vocab):
    """Fused sender + PlusNWrapper.

    x_ref:   (B, FEAT)            f32, VMEM
    w_ref:   (FEAT, L*V)          f32, VMEM
    b_ref:   (1, L*V)             f32, VMEM
    sym_ref: (B, L)               int32   <- argmax symbols + N
    lp_ref:  (B, L)               f32     <- log-prob of greedy symbol
    ent_ref: (B, L)               f32     <- per-position entropy
    `n` is a trace-time Python int (immediate add, no SMEM operand).
    """
    # One lane-dense MXU matmul: (B, FEAT) @ (FEAT, L*V) -> (B, 256).
    logits = jnp.dot(x_ref[...], w_ref[...],
                     preferred_element_type=jnp.float32) + b_ref[...]

    sym_cols, lp_cols, ent_cols = [], [], []
    # Static unroll over positions; each chunk is a (B, VOCAB) lane-slice.
    for l in range(max_len):
        chunk = logits[:, l * vocab:(l + 1) * vocab]              # (B, V)
        m = jnp.max(chunk, axis=-1, keepdims=True)                # (B, 1)
        z = chunk - m
        ez = jnp.exp(z)                                           # EUP
        sumexp = jnp.sum(ez, axis=-1, keepdims=True)              # (B, 1)
        logp = z - jnp.log(sumexp)                                # (B, V)
        probs = ez / sumexp                                       # (B, V)

        # Greedy symbol = first index attaining the max (jnp.argmax tie-break),
        # built from an iota + where + min-reduce (no argmax / no gather).
        ids = lax.broadcasted_iota(jnp.int32, chunk.shape, 1)
        sym = jnp.min(jnp.where(chunk == m, ids, vocab),
                      axis=-1, keepdims=True)                     # (B, 1) int32

        # log-prob of the greedy symbol == max over vocab of logp.
        lp = jnp.max(logp, axis=-1, keepdims=True)                # (B, 1)
        ent = -jnp.sum(probs * logp, axis=-1, keepdims=True)      # (B, 1)

        sym_cols.append(sym)
        lp_cols.append(lp)
        ent_cols.append(ent)

    symbols = jnp.concatenate(sym_cols, axis=1).astype(jnp.int32)  # (B, L)
    sym_ref[...] = symbols + n          # the PlusNWrapper "+N": free VPU add
    lp_ref[...] = jnp.concatenate(lp_cols, axis=1)
    ent_ref[...] = jnp.concatenate(ent_cols, axis=1)


def _full_block(shape):
    # No grid: one full-array block per operand (block == full array dims,
    # so the (8,128) divisibility rule does not apply).
    return pl.BlockSpec(shape, lambda: (0,) * len(shape))


def plus_n_wrapper_forward(params, n, x):
    """PlusNWrapper.forward over the synthetic sender: (r1 + N, r2, r3),
    everything fused into a single Pallas kernel launch."""
    W, b = params
    B = x.shape[0]
    kernel = functools.partial(_fused_sender_plus_n_kernel,
                               n=int(n), max_len=MAX_LEN, vocab=VOCAB)
    out_shapes = (
        jax.ShapeDtypeStruct((B, MAX_LEN), jnp.int32),
        jax.ShapeDtypeStruct((B, MAX_LEN), jnp.float32),
        jax.ShapeDtypeStruct((B, MAX_LEN), jnp.float32),
    )
    return pl.pallas_call(
        kernel,
        out_shape=out_shapes,
        in_specs=[_full_block(x.shape), _full_block(W.shape), _full_block(b.shape)],
        out_specs=tuple(_full_block(s.shape) for s in out_shapes),
    )(x, W, b)


# --------------------- synthetic "wrapped" agent (reference) -----------------


def init_wrapped_params(key):
    kw, kb = jax.random.split(key)
    W = jax.random.normal(kw, (FEAT, MAX_LEN * VOCAB), dtype=jnp.float32) * 0.1
    b = jax.random.normal(kb, (1, MAX_LEN * VOCAB), dtype=jnp.float32) * 0.1
    return W, b


def wrapped_sender_ref(params, x):
    """Plain-JAX reference for the wrapped agent: (symbols, log_probs, entropies)."""
    W, b = params
    logits = (jnp.dot(x, W, precision=jax.lax.Precision.HIGHEST) + b)
    logits = logits.reshape(x.shape[0], MAX_LEN, VOCAB)
    logp = jax.nn.log_softmax(logits, axis=-1)
    symbols = jnp.argmax(logits, axis=-1).astype(jnp.int32)
    log_prob = jnp.take_along_axis(logp, symbols[..., None], axis=-1).squeeze(-1)
    entropy = -jnp.sum(jnp.exp(logp) * logp, axis=-1)
    return symbols, log_prob, entropy


# ----------------------------------- main -------------------------------------

if __name__ == "__main__":
    key = jax.random.PRNGKey(0)
    kx, kp = jax.random.split(key)
    x = jax.random.normal(kx, (BATCH, FEAT), dtype=jnp.float32)
    params = init_wrapped_params(kp)

    out1, out2, out3 = plus_n_wrapper_forward(params, N_OFFSET, x)
    out1 = jax.block_until_ready(out1)
    jax.block_until_ready(out2)
    jax.block_until_ready(out3)

    # Reference check: PlusNWrapper semantics = (sender_r1 + N, r2, r3).
    r1_ref, r2_ref, r3_ref = wrapped_sender_ref(params, x)
    assert out1.shape == (BATCH, MAX_LEN) and out1.dtype == jnp.int32
    assert jnp.array_equal(out1, r1_ref + N_OFFSET)
    assert jnp.allclose(out2, r2_ref, atol=1e-4, rtol=1e-4)
    assert jnp.allclose(out3, r3_ref, atol=1e-4, rtol=1e-4)

    print("KERNEL_OK")
</pallas_src>

<mosaic_0001>
module attributes {stable_mosaic.version = 11 : i64} {
  func.func @_fused_sender_plus_n_kernel(%arg0: memref<2x16xf32, #tpu.memory_space<vmem>>, %arg1: memref<16x256xf32, #tpu.memory_space<vmem>>, %arg2: memref<1x256xf32, #tpu.memory_space<vmem>>, %arg3: memref<2x8xi32, #tpu.memory_space<vmem>>, %arg4: memref<2x8xf32, #tpu.memory_space<vmem>>, %arg5: memref<2x8xf32, #tpu.memory_space<vmem>>) attributes {dimension_semantics = [], scalar_prefetch = 0 : i64, scratch_operands = 0 : i64, tpu.core_type = #tpu.core_type<tc>} {
    %c0 = arith.constant 0 : index
    %c0_0 = arith.constant 0 : index
    %0 = vector.load %arg0[%c0, %c0_0] : memref<2x16xf32, #tpu.memory_space<vmem>>, vector<2x16xf32>
    %c0_1 = arith.constant 0 : index
    %c0_2 = arith.constant 0 : index
    %1 = vector.load %arg1[%c0_1, %c0_2] : memref<16x256xf32, #tpu.memory_space<vmem>>, vector<16x256xf32>
    %cst = arith.constant dense<0.000000e+00> : vector<2x256xf32>
    %2 = tpu.matmul %0, %1, %cst {dimension_numbers = #tpu.dot_dimension_numbers<[1], [0], [0], [1], [0, 0, 1, 1], [], []>} : vector<2x16xf32>, vector<16x256xf32>, vector<2x256xf32> -> vector<2x256xf32>
    %c0_3 = arith.constant 0 : index
    %c0_4 = arith.constant 0 : index
    %3 = vector.load %arg2[%c0_3, %c0_4] : memref<1x256xf32, #tpu.memory_space<vmem>>, vector<1x256xf32>
    %4 = vector.broadcast %3 : vector<1x256xf32> to vector<2x256xf32>
    %5 = arith.addf %2, %4 : vector<2x256xf32>
    %6 = vector.extract_strided_slice %5 {offsets = [0, 0], sizes = [2, 32], strides = [1, 1]} : vector<2x256xf32> to vector<2x32xf32>
    %cst_5 = arith.constant dense<0xFF800000> : vector<2xf32>
    %7 = vector.multi_reduction <maximumf>, %6, %cst_5 [1] : vector<2x32xf32> to vector<2xf32>
    %8 = vector.shape_cast %7 : vector<2xf32> to vector<2x1xf32>
    %9 = vector.broadcast %8 : vector<2x1xf32> to vector<2x32xf32>
    %10 = arith.subf %6, %9 : vector<2x32xf32>
    %11 = math.exp %10 : vector<2x32xf32>
    %cst_6 = arith.constant dense<0.000000e+00> : vector<2xf32>
    %12 = vector.multi_reduction <add>, %11, %cst_6 [1] : vector<2x32xf32> to vector<2xf32>
    %13 = vector.shape_cast %12 : vector<2xf32> to vector<2x1xf32>
    %14 = math.log %13 : vector<2x1xf32>
    %15 = vector.broadcast %14 : vector<2x1xf32> to vector<2x32xf32>
    %16 = arith.subf %10, %15 : vector<2x32xf32>
    %17 = vector.broadcast %13 : vector<2x1xf32> to vector<2x32xf32>
    %18 = arith.divf %11, %17 : vector<2x32xf32>
    %19 = tpu.iota {dimensions = array<i32: 1>} : vector<2x32xi32>
    %20 = vector.broadcast %8 : vector<2x1xf32> to vector<2x32xf32>
    %21 = arith.cmpf oeq, %6, %20 : vector<2x32xf32>
    %c32_i32 = arith.constant 32 : i32
    %22 = vector.broadcast %c32_i32 : i32 to vector<2x32xi32>
    %23 = arith.select %21, %19, %22 : vector<2x32xi1>, vector<2x32xi32>
    %cst_7 = arith.constant dense<2147483647> : vector<2xi32>
    %24 = vector.multi_reduction <minsi>, %23, %cst_7 [1] : vector<2x32xi32> to vector<2xi32>
    %25 = vector.shape_cast %24 : vector<2xi32> to vector<2x1xi32>
    %cst_8 = arith.constant dense<0xFF800000> : vector<2xf32>
    %26 = vector.multi_reduction <maximumf>, %16, %cst_8 [1] : vector<2x32xf32> to vector<2xf32>
    %27 = vector.shape_cast %26 : vector<2xf32> to vector<2x1xf32>
    %28 = arith.mulf %18, %16 : vector<2x32xf32>
    %cst_9 = arith.constant dense<0.000000e+00> : vector<2xf32>
    %29 = vector.multi_reduction <add>, %28, %cst_9 [1] : vector<2x32xf32> to vector<2xf32>
    %30 = vector.shape_cast %29 : vector<2xf32> to vector<2x1xf32>
    %cst_10 = arith.constant 0.000000e+00 : f32
    %31 = vector.broadcast %cst_10 : f32 to vector<2x1xf32>
    %32 = arith.subf %31, %30 : vector<2x1xf32>
    %33 = vector.extract_strided_slice %5 {offsets = [0, 32], sizes = [2, 32], strides = [1, 1]} : vector<2x256xf32> to vector<2x32xf32>
    %cst_11 = arith.constant dense<0xFF800000> : vector<2xf32>
    %34 = vector.multi_reduction <maximumf>, %33, %cst_11 [1] : vector<2x32xf32> to vector<2xf32>
    %35 = vector.shape_cast %34 : vector<2xf32> to vector<2x1xf32>
    %36 = vector.broadcast %35 : vector<2x1xf32> to vector<2x32xf32>
    %37 = arith.subf %33, %36 : vector<2x32xf32>
    %38 = math.exp %37 : vector<2x32xf32>
    %cst_12 = arith.constant dense<0.000000e+00> : vector<2xf32>
    %39 = vector.multi_reduction <add>, %38, %cst_12 [1] : vector<2x32xf32> to vector<2xf32>
    %40 = vector.shape_cast %39 : vector<2xf32> to vector<2x1xf32>
    %41 = math.log %40 : vector<2x1xf32>
    %42 = vector.broadcast %41 : vector<2x1xf32> to vector<2x32xf32>
    %43 = arith.subf %37, %42 : vector<2x32xf32>
    %44 = vector.broadcast %40 : vector<2x1xf32> to vector<2x32xf32>
    %45 = arith.divf %38, %44 : vector<2x32xf32>
    %46 = tpu.iota {dimensions = array<i32: 1>} : vector<2x32xi32>
    %47 = vector.broadcast %35 : vector<2x1xf32> to vector<2x32xf32>
    %48 = arith.cmpf oeq, %33, %47 : vector<2x32xf32>
    %c32_i32_13 = arith.constant 32 : i32
    %49 = vector.broadcast %c32_i32_13 : i32 to vector<2x32xi32>
    %50 = arith.select %48, %46, %49 : vector<2x32xi1>, vector<2x32xi32>
    %cst_14 = arith.constant dense<2147483647> : vector<2xi32>
    %51 = vector.multi_reduction <minsi>, %50, %cst_14 [1] : vector<2x32xi32> to vector<2xi32>
    %52 = vector.shape_cast %51 : vector<2xi32> to vector<2x1xi32>
    %cst_15 = arith.constant dense<0xFF800000> : vector<2xf32>
    %53 = vector.multi_reduction <maximumf>, %43, %cst_15 [1] : vector<2x32xf32> to vector<2xf32>
    %54 = vector.shape_cast %53 : vector<2xf32> to vector<2x1xf32>
    %55 = arith.mulf %45, %43 : vector<2x32xf32>
    %cst_16 = arith.constant dense<0.000000e+00> : vector<2xf32>
    %56 = vector.multi_reduction <add>, %55, %cst_16 [1] : vector<2x32xf32> to vector<2xf32>
    %57 = vector.shape_cast %56 : vector<2xf32> to vector<2x1xf32>
    %cst_17 = arith.constant 0.000000e+00 : f32
    %58 = vector.broadcast %cst_17 : f32 to vector<2x1xf32>
    %59 = arith.subf %58, %57 : vector<2x1xf32>
    %60 = vector.extract_strided_slice %5 {offsets = [0, 64], sizes = [2, 32], strides = [1, 1]} : vector<2x256xf32> to vector<2x32xf32>
    %cst_18 = arith.constant dense<0xFF800000> : vector<2xf32>
    %61 = vector.multi_reduction <maximumf>, %60, %cst_18 [1] : vector<2x32xf32> to vector<2xf32>
    %62 = vector.shape_cast %61 : vector<2xf32> to vector<2x1xf32>
    %63 = vector.broadcast %62 : vector<2x1xf32> to vector<2x32xf32>
    %64 = arith.subf %60, %63 : vector<2x32xf32>
    %65 = math.exp %64 : vector<2x32xf32>
    %cst_19 = arith.constant dense<0.000000e+00> : vector<2xf32>
    %66 = vector.multi_reduction <add>, %65, %cst_19 [1] : vector<2x32xf32> to vector<2xf32>
    %67 = vector.shape_cast %66 : vector<2xf32> to vector<2x1xf32>
    %68 = math.log %67 : vector<2x1xf32>
    %69 = vector.broadcast %68 : vector<2x1xf32> to vector<2x32xf32>
    %70 = arith.subf %64, %69 : vector<2x32xf32>
    %71 = vector.broadcast %67 : vector<2x1xf32> to vector<2x32xf32>
    %72 = arith.divf %65, %71 : vector<2x32xf32>
    %73 = tpu.iota {dimensions = array<i32: 1>} : vector<2x32xi32>
    %74 = vector.broadcast %62 : vector<2x1xf32> to vector<2x32xf32>
    %75 = arith.cmpf oeq, %60, %74 : vector<2x32xf32>
    %c32_i32_20 = arith.constant 32 : i32
    %76 = vector.broadcast %c32_i32_20 : i32 to vector<2x32xi32>
    %77 = arith.select %75, %73, %76 : vector<2x32xi1>, vector<2x32xi32>
    %cst_21 = arith.constant dense<2147483647> : vector<2xi32>
    %78 = vector.multi_reduction <minsi>, %77, %cst_21 [1] : vector<2x32xi32> to vector<2xi32>
    %79 = vector.shape_cast %78 : vector<2xi32> to vector<2x1xi32>
    %cst_22 = arith.constant dense<0xFF800000> : vector<2xf32>
    %80 = vector.multi_reduction <maximumf>, %70, %cst_22 [1] : vector<2x32xf32> to vector<2xf32>
    %81 = vector.shape_cast %80 : vector<2xf32> to vector<2x1xf32>
    %82 = arith.mulf %72, %70 : vector<2x32xf32>
    %cst_23 = arith.constant dense<0.000000e+00> : vector<2xf32>
    %83 = vector.multi_reduction <add>, %82, %cst_23 [1] : vector<2x32xf32> to vector<2xf32>
    %84 = vector.shape_cast %83 : vector<2xf32> to vector<2x1xf32>
    %cst_24 = arith.constant 0.000000e+00 : f32
    %85 = vector.broadcast %cst_24 : f32 to vector<2x1xf32>
    %86 = arith.subf %85, %84 : vector<2x1xf32>
    %87 = vector.extract_strided_slice %5 {offsets = [0, 96], sizes = [2, 32], strides = [1, 1]} : vector<2x256xf32> to vector<2x32xf32>
    %cst_25 = arith.constant dense<0xFF800000> : vector<2xf32>
    %88 = vector.multi_reduction <maximumf>, %87, %cst_25 [1] : vector<2x32xf32> to vector<2xf32>
    %89 = vector.shape_cast %88 : vector<2xf32> to vector<2x1xf32>
    %90 = vector.broadcast %89 : vector<2x1xf32> to vector<2x32xf32>
    %91 = arith.subf %87, %90 : vector<2x32xf32>
    %92 = math.exp %91 : vector<2x32xf32>
    %cst_26 = arith.constant dense<0.000000e+00> : vector<2xf32>
    %93 = vector.multi_reduction <add>, %92, %cst_26 [1] : vector<2x32xf32> to vector<2xf32>
    %94 = vector.shape_cast %93 : vector<2xf32> to vector<2x1xf32>
    %95 = math.log %94 : vector<2x1xf32>
    %96 = vector.broadcast %95 : vector<2x1xf32> to vector<2x32xf32>
    %97 = arith.subf %91, %96 : vector<2x32xf32>
    %98 = vector.broadcast %94 : vector<2x1xf32> to vector<2x32xf32>
    %99 = arith.divf %92, %98 : vector<2x32xf32>
    %100 = tpu.iota {dimensions = array<i32: 1>} : vector<2x32xi32>
    %101 = vector.broadcast %89 : vector<2x1xf32> to vector<2x32xf32>
    %102 = arith.cmpf oeq, %87, %101 : vector<2x32xf32>
    %c32_i32_27 = arith.constant 32 : i32
    %103 = vector.broadcast %c32_i32_27 : i32 to vector<2x32xi32>
    %104 = arith.select %102, %100, %103 : vector<2x32xi1>, vector<2x32xi32>
    %cst_28 = arith.constant dense<2147483647> : vector<2xi32>
    %105 = vector.multi_reduction <minsi>, %104, %cst_28 [1] : vector<2x32xi32> to vector<2xi32>
    %106 = vector.shape_cast %105 : vector<2xi32> to vector<2x1xi32>
    %cst_29 = arith.constant dense<0xFF800000> : vector<2xf32>
    %107 = vector.multi_reduction <maximumf>, %97, %cst_29 [1] : vector<2x32xf32> to vector<2xf32>
    %108 = vector.shape_cast %107 : vector<2xf32> to vector<2x1xf32>
    %109 = arith.mulf %99, %97 : vector<2x32xf32>
    %cst_30 = arith.constant dense<0.000000e+00> : vector<2xf32>
    %110 = vector.multi_reduction <add>, %109, %cst_30 [1] : vector<2x32xf32> to vector<2xf32>
    %111 = vector.shape_cast %110 : vector<2xf32> to vector<2x1xf32>
    %cst_31 = arith.constant 0.000000e+00 : f32
    %112 = vector.broadcast %cst_31 : f32 to vector<2x1xf32>
    %113 = arith.subf %112, %111 : vector<2x1xf32>
    %114 = vector.extract_strided_slice %5 {offsets = [0, 128], sizes = [2, 32], strides = [1, 1]} : vector<2x256xf32> to vector<2x32xf32>
    %cst_32 = arith.constant dense<0xFF800000> : vector<2xf32>
    %115 = vector.multi_reduction <maximumf>, %114, %cst_32 [1] : vector<2x32xf32> to vector<2xf32>
    %116 = vector.shape_cast %115 : vector<2xf32> to vector<2x1xf32>
    %117 = vector.broadcast %116 : vector<2x1xf32> to vector<2x32xf32>
    %118 = arith.subf %114, %117 : vector<2x32xf32>
    %119 = math.exp %118 : vector<2x32xf32>
    %cst_33 = arith.constant dense<0.000000e+00> : vector<2xf32>
    %120 = vector.multi_reduction <add>, %119, %cst_33 [1] : vector<2x32xf32> to vector<2xf32>
    %121 = vector.shape_cast %120 : vector<2xf32> to vector<2x1xf32>
    %122 = math.log %121 : vector<2x1xf32>
    %123 = vector.broadcast %122 : vector<2x1xf32> to vector<2x32xf32>
    %124 = arith.subf %118, %123 : vector<2x32xf32>
    %125 = vector.broadcast %121 : vector<2x1xf32> to vector<2x32xf32>
    %126 = arith.divf %119, %125 : vector<2x32xf32>
    %127 = tpu.iota {dimensions = array<i32: 1>} : vector<2x32xi32>
    %128 = vector.broadcast %116 : vector<2x1xf32> to vector<2x32xf32>
    %129 = arith.cmpf oeq, %114, %128 : vector<2x32xf32>
    %c32_i32_34 = arith.constant 32 : i32
    %130 = vector.broadcast %c32_i32_34 : i32 to vector<2x32xi32>
    %131 = arith.select %129, %127, %130 : vector<2x32xi1>, vector<2x32xi32>
    %cst_35 = arith.constant dense<2147483647> : vector<2xi32>
    %132 = vector.multi_reduction <minsi>, %131, %cst_35 [1] : vector<2x32xi32> to vector<2xi32>
    %133 = vector.shape_cast %132 : vector<2xi32> to vector<2x1xi32>
    %cst_36 = arith.constant dense<0xFF800000> : vector<2xf32>
    %134 = vector.multi_reduction <maximumf>, %124, %cst_36 [1] : vector<2x32xf32> to vector<2xf32>
    %135 = vector.shape_cast %134 : vector<2xf32> to vector<2x1xf32>
    %136 = arith.mulf %126, %124 : vector<2x32xf32>
    %cst_37 = arith.constant dense<0.000000e+00> : vector<2xf32>
    %137 = vector.multi_reduction <add>, %136, %cst_37 [1] : vector<2x32xf32> to vector<2xf32>
    %138 = vector.shape_cast %137 : vector<2xf32> to vector<2x1xf32>
    %cst_38 = arith.constant 0.000000e+00 : f32
    %139 = vector.broadcast %cst_38 : f32 to vector<2x1xf32>
    %140 = arith.subf %139, %138 : vector<2x1xf32>
    %141 = vector.extract_strided_slice %5 {offsets = [0, 160], sizes = [2, 32], strides = [1, 1]} : vector<2x256xf32> to vector<2x32xf32>
    %cst_39 = arith.constant dense<0xFF800000> : vector<2xf32>
    %142 = vector.multi_reduction <maximumf>, %141, %cst_39 [1] : vector<2x32xf32> to vector<2xf32>
    %143 = vector.shape_cast %142 : vector<2xf32> to vector<2x1xf32>
    %144 = vector.broadcast %143 : vector<2x1xf32> to vector<2x32xf32>
    %145 = arith.subf %141, %144 : vector<2x32xf32>
    %146 = math.exp %145 : vector<2x32xf32>
    %cst_40 = arith.constant dense<0.000000e+00> : vector<2xf32>
    %147 = vector.multi_reduction <add>, %146, %cst_40 [1] : vector<2x32xf32> to vector<2xf32>
    %148 = vector.shape_cast %147 : vector<2xf32> to vector<2x1xf32>
    %149 = math.log %148 : vector<2x1xf32>
    %150 = vector.broadcast %149 : vector<2x1xf32> to vector<2x32xf32>
    %151 = arith.subf %145, %150 : vector<2x32xf32>
    %152 = vector.broadcast %148 : vector<2x1xf32> to vector<2x32xf32>
    %153 = arith.divf %146, %152 : vector<2x32xf32>
    %154 = tpu.iota {dimensions = array<i32: 1>} : vector<2x32xi32>
    %155 = vector.broadcast %143 : vector<2x1xf32> to vector<2x32xf32>
    %156 = arith.cmpf oeq, %141, %155 : vector<2x32xf32>
    %c32_i32_41 = arith.constant 32 : i32
    %157 = vector.broadcast %c32_i32_41 : i32 to vector<2x32xi32>
    %158 = arith.select %156, %154, %157 : vector<2x32xi1>, vector<2x32xi32>
    %cst_42 = arith.constant dense<2147483647> : vector<2xi32>
    %159 = vector.multi_reduction <minsi>, %158, %cst_42 [1] : vector<2x32xi32> to vector<2xi32>
    %160 = vector.shape_cast %159 : vector<2xi32> to vector<2x1xi32>
    %cst_43 = arith.constant dense<0xFF800000> : vector<2xf32>
    %161 = vector.multi_reduction <maximumf>, %151, %cst_43 [1] : vector<2x32xf32> to vector<2xf32>
    %162 = vector.shape_cast %161 : vector<2xf32> to vector<2x1xf32>
    %163 = arith.mulf %153, %151 : vector<2x32xf32>
    %cst_44 = arith.constant dense<0.000000e+00> : vector<2xf32>
    %164 = vector.multi_reduction <add>, %163, %cst_44 [1] : vector<2x32xf32> to vector<2xf32>
    %165 = vector.shape_cast %164 : vector<2xf32> to vector<2x1xf32>
    %cst_45 = arith.constant 0.000000e+00 : f32
    %166 = vector.broadcast %cst_45 : f32 to vector<2x1xf32>
    %167 = arith.subf %166, %165 : vector<2x1xf32>
    %168 = vector.extract_strided_slice %5 {offsets = [0, 192], sizes = [2, 32], strides = [1, 1]} : vector<2x256xf32> to vector<2x32xf32>
    %cst_46 = arith.constant dense<0xFF800000> : vector<2xf32>
    %169 = vector.multi_reduction <maximumf>, %168, %cst_46 [1] : vector<2x32xf32> to vector<2xf32>
    %170 = vector.shape_cast %169 : vector<2xf32> to vector<2x1xf32>
    %171 = vector.broadcast %170 : vector<2x1xf32> to vector<2x32xf32>
    %172 = arith.subf %168, %171 : vector<2x32xf32>
    %173 = math.exp %172 : vector<2x32xf32>
    %cst_47 = arith.constant dense<0.000000e+00> : vector<2xf32>
    %174 = vector.multi_reduction <add>, %173, %cst_47 [1] : vector<2x32xf32> to vector<2xf32>
    %175 = vector.shape_cast %174 : vector<2xf32> to vector<2x1xf32>
    %176 = math.log %175 : vector<2x1xf32>
    %177 = vector.broadcast %176 : vector<2x1xf32> to vector<2x32xf32>
    %178 = arith.subf %172, %177 : vector<2x32xf32>
    %179 = vector.broadcast %175 : vector<2x1xf32> to vector<2x32xf32>
    %180 = arith.divf %173, %179 : vector<2x32xf32>
    %181 = tpu.iota {dimensions = array<i32: 1>} : vector<2x32xi32>
    %182 = vector.broadcast %170 : vector<2x1xf32> to vector<2x32xf32>
    %183 = arith.cmpf oeq, %168, %182 : vector<2x32xf32>
    %c32_i32_48 = arith.constant 32 : i32
    %184 = vector.broadcast %c32_i32_48 : i32 to vector<2x32xi32>
    %185 = arith.select %183, %181, %184 : vector<2x32xi1>, vector<2x32xi32>
    %cst_49 = arith.constant dense<2147483647> : vector<2xi32>
    %186 = vector.multi_reduction <minsi>, %185, %cst_49 [1] : vector<2x32xi32> to vector<2xi32>
    %187 = vector.shape_cast %186 : vector<2xi32> to vector<2x1xi32>
    %cst_50 = arith.constant dense<0xFF800000> : vector<2xf32>
    %188 = vector.multi_reduction <maximumf>, %178, %cst_50 [1] : vector<2x32xf32> to vector<2xf32>
    %189 = vector.shape_cast %188 : vector<2xf32> to vector<2x1xf32>
    %190 = arith.mulf %180, %178 : vector<2x32xf32>
    %cst_51 = arith.constant dense<0.000000e+00> : vector<2xf32>
    %191 = vector.multi_reduction <add>, %190, %cst_51 [1] : vector<2x32xf32> to vector<2xf32>
    %192 = vector.shape_cast %191 : vector<2xf32> to vector<2x1xf32>
    %cst_52 = arith.constant 0.000000e+00 : f32
    %193 = vector.broadcast %cst_52 : f32 to vector<2x1xf32>
    %194 = arith.subf %193, %192 : vector<2x1xf32>
    %195 = vector.extract_strided_slice %5 {offsets = [0, 224], sizes = [2, 32], strides = [1, 1]} : vector<2x256xf32> to vector<2x32xf32>
    %cst_53 = arith.constant dense<0xFF800000> : vector<2xf32>
    %196 = vector.multi_reduction <maximumf>, %195, %cst_53 [1] : vector<2x32xf32> to vector<2xf32>
    %197 = vector.shape_cast %196 : vector<2xf32> to vector<2x1xf32>
    %198 = vector.broadcast %197 : vector<2x1xf32> to vector<2x32xf32>
    %199 = arith.subf %195, %198 : vector<2x32xf32>
    %200 = math.exp %199 : vector<2x32xf32>
    %cst_54 = arith.constant dense<0.000000e+00> : vector<2xf32>
    %201 = vector.multi_reduction <add>, %200, %cst_54 [1] : vector<2x32xf32> to vector<2xf32>
    %202 = vector.shape_cast %201 : vector<2xf32> to vector<2x1xf32>
    %203 = math.log %202 : vector<2x1xf32>
    %204 = vector.broadcast %203 : vector<2x1xf32> to vector<2x32xf32>
    %205 = arith.subf %199, %204 : vector<2x32xf32>
    %206 = vector.broadcast %202 : vector<2x1xf32> to vector<2x32xf32>
    %207 = arith.divf %200, %206 : vector<2x32xf32>
    %208 = tpu.iota {dimensions = array<i32: 1>} : vector<2x32xi32>
    %209 = vector.broadcast %197 : vector<2x1xf32> to vector<2x32xf32>
    %210 = arith.cmpf oeq, %195, %209 : vector<2x32xf32>
    %c32_i32_55 = arith.constant 32 : i32
    %211 = vector.broadcast %c32_i32_55 : i32 to vector<2x32xi32>
    %212 = arith.select %210, %208, %211 : vector<2x32xi1>, vector<2x32xi32>
    %cst_56 = arith.constant dense<2147483647> : vector<2xi32>
    %213 = vector.multi_reduction <minsi>, %212, %cst_56 [1] : vector<2x32xi32> to vector<2xi32>
    %214 = vector.shape_cast %213 : vector<2xi32> to vector<2x1xi32>
    %cst_57 = arith.constant dense<0xFF800000> : vector<2xf32>
    %215 = vector.multi_reduction <maximumf>, %205, %cst_57 [1] : vector<2x32xf32> to vector<2xf32>
    %216 = vector.shape_cast %215 : vector<2xf32> to vector<2x1xf32>
    %217 = arith.mulf %207, %205 : vector<2x32xf32>
    %cst_58 = arith.constant dense<0.000000e+00> : vector<2xf32>
    %218 = vector.multi_reduction <add>, %217, %cst_58 [1] : vector<2x32xf32> to vector<2xf32>
    %219 = vector.shape_cast %218 : vector<2xf32> to vector<2x1xf32>
    %cst_59 = arith.constant 0.000000e+00 : f32
    %220 = vector.broadcast %cst_59 : f32 to vector<2x1xf32>
    %221 = arith.subf %220, %219 : vector<2x1xf32>
    %222 = tpu.concatenate %25, %52, %79, %106, %133, %160, %187, %214 in 1 : vector<2x1xi32>, vector<2x1xi32>, vector<2x1xi32>, vector<2x1xi32>, vector<2x1xi32>, vector<2x1xi32>, vector<2x1xi32>, vector<2x1xi32> -> vector<2x8xi32>
    %c3_i32 = arith.constant 3 : i32
    %223 = vector.broadcast %c3_i32 : i32 to vector<2x8xi32>
    %224 = arith.addi %222, %223 : vector<2x8xi32>
    %c0_60 = arith.constant 0 : index
    %c0_61 = arith.constant 0 : index
    %225 = vector.load %arg3[%c0_60, %c0_61] : memref<2x8xi32, #tpu.memory_space<vmem>>, vector<2x8xi32>
    tpu.vector_store %arg3[%c0_60, %c0_61], %224 {strides = array<i32>} : memref<2x8xi32, #tpu.memory_space<vmem>>, vector<2x8xi32>,
    %226 = tpu.concatenate %27, %54, %81, %108, %135, %162, %189, %216 in 1 : vector<2x1xf32>, vector<2x1xf32>, vector<2x1xf32>, vector<2x1xf32>, vector<2x1xf32>, vector<2x1xf32>, vector<2x1xf32>, vector<2x1xf32> -> vector<2x8xf32>
    %c0_62 = arith.constant 0 : index
    %c0_63 = arith.constant 0 : index
    %227 = vector.load %arg4[%c0_62, %c0_63] : memref<2x8xf32, #tpu.memory_space<vmem>>, vector<2x8xf32>
    tpu.vector_store %arg4[%c0_62, %c0_63], %226 {strides = array<i32>} : memref<2x8xf32, #tpu.memory_space<vmem>>, vector<2x8xf32>,
    %228 = tpu.concatenate %32, %59, %86, %113, %140, %167, %194, %221 in 1 : vector<2x1xf32>, vector<2x1xf32>, vector<2x1xf32>, vector<2x1xf32>, vector<2x1xf32>, vector<2x1xf32>, vector<2x1xf32>, vector<2x1xf32> -> vector<2x8xf32>
    %c0_64 = arith.constant 0 : index
    %c0_65 = arith.constant 0 : index
    %229 = vector.load %arg5[%c0_64, %c0_65] : memref<2x8xf32, #tpu.memory_space<vmem>>, vector<2x8xf32>
    tpu.vector_store %arg5[%c0_64, %c0_65], %228 {strides = array<i32>} : memref<2x8xf32, #tpu.memory_space<vmem>>, vector<2x8xf32>,
    return
  }
}

</mosaic_0001>

<bundles_post_ra>
// kernel: tpu_custom_call.1
= control target key start
LH: loop header
LB: loop body
LE: loop exit
PB: predicated region body
PF: predicated region fallthrough
CT: control target
= control target key end

     0   :  { %11 = vsyncpa [#allocation3], 0  ;;  %s1099_s0 = inlined_call_operand.hbm [shape: f32[2,16], index: 0, kind: input, shape index: {}]   ;;  %s1100_s1 = inlined_call_operand.hbm [shape: f32[16,256], index: 1, kind: input, shape index: {}]   ;;  %s1101_s2 = inlined_call_operand.vmem [shape: f32[1,256], index: 2, kind: input, shape index: {}]   ;;  %s1102_s3 = inlined_call_operand.hbm [shape: s32[2,8], index: 3, kind: output, shape index: {0}]   ;;  %s1103_s4 = inlined_call_operand.hbm [shape: f32[2,8], index: 4, kind: output, shape index: {1}]   ;;  %s1104_s5 = inlined_call_operand.hbm [shape: f32[2,8], index: 5, kind: output, shape index: {2}]  }
   0x1   :  { %12 = vsyncpa [#allocation6], 0 }
   0x2   :  { %13 = vsyncpa [#allocation4], 0 }
   0x3   :  { %14 = vsyncpa [#allocation9], 0  ;;  %s753_s18 = smov [#allocation2]   ;;  %s754_s20 = smov [#allocation5]  }
   0x4   :  { %s21_s19 = sshll.u32 %s753_s18, 4  ;;  %s30_s21 = sshll.u32 %s754_s20, 4  ;;  %s22_s19 = int_to_ptr.vmem [resolvable:$true] %s21_s19  ;;  %s31_s21 = int_to_ptr.vmem [resolvable:$true] %s30_s21 }
   0x5   :  { %s653_s22 = scalar_lea.vmem %s22_s19, 32  ;;  %p658_p1 = scmp.lt.s32.totalorder %s22_s19, %s22_s19 }
   0x6   :  { %p654_p0 = scmp.ne.s32.totalorder %s22_s19, %s653_s22  ;;  %p659_p2 = scmp.lt.s32.totalorder %s653_s22, %s653_s22 }
   0x8   :  { %p660_p3 = por %p659_p2, %p658_p1 }
   0xa   :  { %p661_p4 = pnand %p660_p3, %p654_p0 }
   0xc   :  { %664 = shalt.err (!%p661_p4)
}
   0xd   :  { %24 = dma.hbm_to_vmem [thread:$0]  %s1099_s0, 32, %s22_s19, [#allocation3]  }
   0xe   :  { %s673_s25 = scalar_lea.vmem %s31_s21, 512  ;;  %p678_p6 = scmp.lt.s32.totalorder %s31_s21, %s31_s21 }
   0xf   :  { %p674_p5 = scmp.ne.s32.totalorder %s31_s21, %s673_s25  ;;  %p679_p7 = scmp.lt.s32.totalorder %s673_s25, %s673_s25 }
  0x11   :  { %p680_p8 = por %p679_p7, %p678_p6 }
  0x13   :  { %p681_p9 = pnand %p680_p8, %p674_p5 }
  0x15   :  { %684 = shalt.err (!%p681_p9)
}
  0x16   :  { %s755_s26 = smov 256   ;;  %s756_s27 = smov 16  }
  0x17   :  { %36 = dma.hbm_to_vmem [thread:$0]  %s1100_s1, 512, %s31_s21, [#allocation6], %s755_s26, %s755_s26, %s756_s27  }
  0x18   :  { %745 = dma.done.wait [#allocation3], 32  }
  0x19   :  { %746 = vsyncadd [#allocation3], 4294967264 }
  0x1a   :  { %747 = dma.done.wait [#allocation6], 512  }
  0x1b   :  { %748 = vsyncadd [#allocation6], 4294966784  ;;  %v52_v0 = vlaneseq  ;;  %v757_v1 = vmov 0.0   ;;  %s758_s0 = smov 32   ;;  %v49_v3 = vld [vmem:[#allocation5 + $0x18] sm:$0xff]  ;;  %v48_v4 = vld [vmem:[#allocation5 + $0x10] sm:$0xff] }
  0x1c   :  { %130 = vmatprep.mubr.f32.mxu0 %v757_v1  ;;  %v47_v5 = vld [vmem:[#allocation5 + $0x8] sm:$0xff]  ;;  %94 = vmatprep.subr.mxu0 %v49_v3  ;;  %v46_v6 = vld [vmem:[#allocation5] sm:$0xff]  ;;  %v45_v7 = vld [vmem:[#allocation2] sm:$0x3]  ;;  %vm62_vm0 = vcmask 130048   ;;  %vm137_vm1 = vcmask 254976  }
  0x1d   :  { %v800_v2 = vand.u32 127, %v52_v0  ;;  %95 = vmatpush1.msra.mxu0 %v48_v4  ;;  %v53_v8 = vshrl.u32 %v52_v0, 7  ;;  %v50_v10 = vld [vmem:[%s1101_s2] sm:$0x3]  ;;  %vm229_vm2 = vcmask 779776   ;;  %vm179_vm3 = vcmask 517376  }
  0x1e   :  { %96 = vmatprep.subr.mxu0 %v47_v5  ;;  %vm279_vm4 = vcmask 1042176   ;;  %s759_s2 = smov 64   ;;  %s760_s6 = smov 96  }
  0x1f   :  { %199 = vrot.lane.b32.xlu0 %v800_v2, %s758_s0  ;;  %97 = vmatpush1.msra.mxu0 %v46_v6  ;;  %v54_v9 = vsub.s32 0, %v53_v8  ;;  %v58_v11 = vsub.s32 1, %v53_v8  ;;  %s761_s7 = smov [#allocation7]  }
  0x20   :  { %585 = vmatmul.mubr.msk.f32.vlgmr.msra.gmra.mxu0 %vm62_vm0, %v45_v7  ;;  %s548_s8 = sshll.u32 %s761_s7, 4  ;;  %s549_s8 = int_to_ptr.vmem [resolvable:$true] %s548_s8 }
  0x21   :  { %v55_v12 = vrot.slane %v50_v10, %v54_v9  ;;  %v59_v13 = vrot.slane %v50_v10, %v58_v11  ;;  %s685_s9 = scalar_lea.vmem %s549_s8, 32  ;;  %p690_p11 = scmp.lt.s32.totalorder %s549_s8, %s549_s8 }
  0x22   :  { %p686_p10 = scmp.ne.s32.totalorder %s549_s8, %s685_s9  ;;  %p691_p12 = scmp.lt.s32.totalorder %s685_s9, %s685_s9 }
  0x24   :  { %p692_p13 = por %p691_p12, %p690_p11 }
  0x26   :  { %p693_p0 = pnand %p692_p13, %p686_p10 }
  0x91   :  { %v200_v25 = vpop.permute.xlu0 %199 }
  0xe0   :  { %v132_v14 = vpop.f32.mrf.mxu0 }
  0xe1   :  { %v807_v15 = vadd.f32 %v132_v14, %v55_v12 }
  0xe2   :  { %v134_v16 = vpop.f32.mrf.mxu0 }
  0xe3   :  { %v809_v17 = vadd.f32 %v134_v16, %v59_v13  ;;  %v138_v18 = vsel %vm137_vm1, %v807_v15, -inf  ;;  %v180_v20 = vsel %vm179_vm3, %v807_v15, -inf  ;;  %v230_v21 = vsel %vm229_vm2, %v807_v15, -inf }
  0xe4   :  { %139 = vmax.xlane.f32.xlu0 %v138_v18  ;;  %v280_v22 = vsel %vm279_vm4, %v807_v15, -inf }
  0xe5   :  { %v415_v19 = vsel %vm229_vm2, %v809_v17, -inf  ;;  %v368_v23 = vsel %vm179_vm3, %v809_v17, -inf  ;;  %v462_v24 = vsel %vm279_vm4, %v809_v17, -inf  ;;  %v329_v3 = vsel %vm137_vm1, %v809_v17, -inf }
  0xe6   :  { %416 = vmax.xlane.f32.xlu1 %v415_v19 }
  0xe8   :  { %181 = vmax.xlane.f32.xlu0 %v180_v20 }
  0xec   :  { %231 = vmax.xlane.f32.xlu0 %v230_v21 }
  0xf0   :  { %281 = vmax.xlane.f32.xlu0 %v280_v22 }
  0xf4   :  { %369 = vmax.xlane.f32.xlu0 %v368_v23 }
  0xf7   :  { %249 = vrot.lane.b32.xlu1 %v800_v2, %s759_s2 }
  0xf8   :  { %463 = vmax.xlane.f32.xlu0 %v462_v24 }
 0x16d   :  { %v140_v26 = vpop.xlane.xlu0 %139 }
 0x16e   :  { %vm154_vm5 = vcmp.eq.f32.partialorder %v807_v15, %v140_v26  ;;  %v885_v58 = vsub.f32 %v807_v15, %v140_v26 }
 0x16f   :  { %v155_v27 = vsel %vm154_vm5, %v800_v2, 32  ;;  %v829_v28 = vpop.xlane.xlu1 %416 }
 0x170   :  { %v832_v29 = vsel %vm137_vm1, %v155_v27, 2147483647  ;;  %v142_v59 = vmul.f32 1.442695, %v885_v58  ;;  %v896_v62 = vsub.f32 %v809_v17, %v829_v28  ;;  %vm433_vm13 = vcmp.eq.f32.partialorder %v809_v17, %v829_v28 }
 0x171   :  { %v182_v30 = vpop.xlane.xlu0 %181  ;;  %v158_v31 = vshra.s32 %v832_v29, 16  ;;  %v157_v7 = vand.u32 65535, %v832_v29 }
 0x172   :  { %vm198_vm6 = vcmp.eq.f32.partialorder %v807_v15, %v182_v30  ;;  %v851_v41 = vsub.f32 %v807_v15, %v182_v30  ;;  %v419_v0 = vmul.f32 1.442695, %v896_v62 }
 0x173   :  { %v201_v32 = vsel %vm198_vm6, %v200_v25, 32  ;;  %v836_v33 = vcvt.s32.f32 %v158_v31  ;;  %v843_v37 = vpop.permute.xlu1 %249  ;;  %v159_v9 = vcvt.s32.f32 %v157_v7 }
 0x174   :  { %v839_v34 = vsel %vm179_vm3, %v201_v32, 2147483647  ;;  %v184_v48 = vmul.f32 1.442695, %v851_v41 }
 0x175   :  { %161 = vmin.xlane.f32.xlu1 %v836_v33  ;;  %v232_v35 = vpop.xlane.xlu0 %231  ;;  %v204_v36 = vshra.s32 %v839_v34, 16  ;;  %v203_v10 = vand.u32 65535, %v839_v34 }
 0x176   :  { %v846_v38 = vsub.f32 %v807_v15, %v232_v35  ;;  %vm248_vm7 = vcmp.eq.f32.partialorder %v807_v15, %v232_v35  ;;  %v434_v35 = vsel %vm433_vm13, %v843_v37, 32  ;;  %vm521_vm13 = vcmask 56320  }
 0x177   :  { %v251_v39 = vsel %vm248_vm7, %v843_v37, 32  ;;  %v206_v40 = vcvt.s32.f32 %v204_v36  ;;  %v205_v13 = vcvt.s32.f32 %v203_v10  ;;  %vm509_vm7 = vcmask 7168  }
 0x178   :  { %v234_v42 = vmul.f32 1.442695, %v846_v38  ;;  %v252_v43 = vsel %vm229_vm2, %v251_v39, 2147483647 }
 0x179   :  { %207 = vmin.xlane.f32.xlu1 %v206_v40  ;;  %v855_v44 = vpop.xlane.xlu0 %281  ;;  %v254_v45 = vshra.s32 %v252_v43, 16  ;;  %v253_v14 = vand.u32 65535, %v252_v43 }
 0x17a   :  { %597 = vpow2.f32 %v234_v42  ;;  %v859_v46 = vsub.f32 %v807_v15, %v855_v44  ;;  %vm298_vm12 = vcmp.eq.f32.partialorder %v807_v15, %v855_v44 }
 0x17b   :  { %v256_v47 = vcvt.s32.f32 %v254_v45  ;;  %v255_v19 = vcvt.s32.f32 %v253_v14 }
 0x17c   :  { %v284_v49 = vmul.f32 1.442695, %v859_v46 }
 0x17d   :  { %257 = vmin.xlane.f32.xlu1 %v256_v47  ;;  %v370_v50 = vpop.xlane.xlu0 %369 }
 0x17e   :  { %599 = vpow2.f32 %v284_v49  ;;  %v864_v51 = vsub.f32 %v809_v17, %v370_v50  ;;  %vm386_vm8 = vcmp.eq.f32.partialorder %v809_v17, %v370_v50 }
 0x17f   :  { %v867_v52 = vsel %vm386_vm8, %v200_v25, 32  ;;  %601 = vpow2.f32 %v184_v48  ;;  %vm511_vm8 = vcmask 15360  }
 0x180   :  { %v372_v53 = vmul.f32 1.442695, %v864_v51 }
 0x181   :  { %v464_v63 = vpop.xlane.xlu0 %463 }
 0x182   :  { %603 = vpow2.f32 %v372_v53  ;;  %v900_v1 = vsub.f32 %v809_v17, %v464_v63  ;;  %vm480_vm14 = vcmp.eq.f32.partialorder %v809_v17, %v464_v63  ;;  %v966_v63 = vsel %vm179_vm3, %v867_v52, 2147483647 }
 0x183   :  { %605 = vpow2.f32 %v142_v59 }
 0x184   :  { %607 = vpow2.f32 %v419_v0  ;;  %v466_v4 = vmul.f32 1.442695, %v900_v1  ;;  %v390_v0 = vshra.s32 %v966_v63, 16 }
 0x186   :  { %609 = vpow2.f32 %v466_v4 }
 0x187   :  { %v870_v54 = vpop.eup %597 }
 0x188   :  { %237 = vrot.lane.b32.xlu0 %v870_v54, %s759_s2 }
 0x18b   :  { %v874_v55 = vpop.eup %599 }
 0x18c   :  { %287 = vrot.lane.b32.xlu0 %v874_v55, %s758_s0  ;;  %v878_v56 = vpop.eup %601 }
 0x18e   :  { %187 = vrot.lane.b32.xlu1 %v878_v56, %s760_s6 }
 0x18f   :  { %v882_v57 = vpop.eup %603 }
 0x190   :  { %v890_v60 = vpop.eup %605 }
 0x191   :  { %v144_v61 = vsel %vm137_vm1, %v890_v60, 0.0  ;;  %v907_v5 = vpop.eup %607 }
 0x192   :  { %375 = vrot.lane.b32.xlu1 %v882_v57, %s760_s6 }
 0x193   :  { %v911_v6 = vpop.eup %609 }
 0x1ab   :  { %145 = vadd.xlane.f32.xlu0 %v144_v61 }
 0x1b6   :  { %330 = vmax.xlane.f32.xlu1 %v329_v3  ;;  %v969_v3 = vcvt.s32.f32 %v390_v0 }
 0x1c1   :  { %299 = vrot.lane.b32.xlu0 %v800_v2, %s760_s6 }
 0x1c5   :  { %422 = vrot.lane.b32.xlu0 %v907_v5, %s759_s2 }
 0x1c9   :  { %469 = vrot.lane.b32.xlu0 %v911_v6, %s758_s0 }
 0x1fa   :  { %v238_v21 = vpop.permute.xlu0 %237 }
 0x1fb   :  { %v240_v24 = vsel %vm137_vm1, %v238_v21, 0.0 }
 0x1fe   :  { %v916_v8 = vpop.xlane.xlu1 %161  ;;  %v288_v25 = vpop.permute.xlu0 %287 }
 0x1ff   :  { %vm163_vm9 = vcmp.eq.f32.partialorder %v836_v33, %v916_v8  ;;  %v290_v26 = vsel %vm137_vm1, %v288_v25, 0.0 }
 0x200   :  { %v164_v11 = vsel %vm163_vm9, %v159_v9, inf }
 0x202   :  { %v921_v12 = vpop.xlane.xlu1 %207 }
 0x203   :  { %vm209_vm10 = vcmp.eq.f32.partialorder %v206_v40, %v921_v12  ;;  %v940_v40 = vsel %vm229_vm2, %v434_v35, 2147483647 }
 0x204   :  { %v210_v16 = vsel %vm209_vm10, %v205_v13, inf  ;;  %v437_v28 = vshra.s32 %v940_v40, 16 }
 0x206   :  { %v924_v18 = vpop.xlane.xlu1 %257 }
 0x207   :  { %vm259_vm11 = vcmp.eq.f32.partialorder %v256_v47, %v924_v18  ;;  %v951_v47 = vcvt.s32.f32 %v437_v28 }
 0x208   :  { %v260_v20 = vsel %vm259_vm11, %v255_v19, inf  ;;  %vm515_vm11 = vcmask 31744  }
 0x20a   :  { %v188_v22 = vpop.permute.xlu1 %187 }
 0x20b   :  { %v190_v23 = vsel %vm137_vm1, %v188_v22, 0.0 }
 0x20c   :  { %191 = vadd.xlane.f32.xlu0 %v190_v23 }
 0x20e   :  { %v376_v32 = vpop.permute.xlu1 %375 }
 0x20f   :  { %v378_v42 = vsel %vm137_vm1, %v376_v32, 0.0 }
 0x210   :  { %241 = vadd.xlane.f32.xlu0 %v240_v24 }
 0x214   :  { %291 = vadd.xlane.f32.xlu0 %v290_v26 }
 0x234   :  { %v146_v27 = vpop.xlane.xlu0 %145 }
 0x238   :  { %v300_v29 = vpop.permute.xlu0 %299 }
 0x239   :  { %v301_v30 = vsel %vm298_vm12, %v300_v29, 32  ;;  %v481_v43 = vsel %vm480_vm14, %v300_v29, 32  ;;  %vm519_vm12 = vcmask 48128   ;;  %vm524_vm14 = vcmask 58368  }
 0x23a   :  { %v302_v31 = vsel %vm279_vm4, %v301_v30, 2147483647  ;;  %v947_v37 = vsel %vm279_vm4, %v481_v43, 2147483647 }
 0x23b   :  { %v304_v33 = vshra.s32 %v302_v31, 16  ;;  %v484_v48 = vshra.s32 %v947_v37, 16  ;;  %v303_v14 = vand.u32 65535, %v302_v31 }
 0x23c   :  { %v423_v44 = vpop.permute.xlu0 %422 }
 0x23d   :  { %v306_v34 = vcvt.s32.f32 %v304_v33  ;;  %v425_v45 = vsel %vm137_vm1, %v423_v44, 0.0  ;;  %v956_v50 = vcvt.s32.f32 %v484_v48  ;;  %v305_v24 = vcvt.s32.f32 %v303_v14 }
 0x23f   :  { %v331_v36 = vpop.xlane.xlu1 %330  ;;  %307 = vmin.xlane.f32.xlu1 %v306_v34 }
 0x240   :  { %v937_v39 = vsub.f32 %v809_v17, %v331_v36  ;;  %vm343_vm15 = vcmp.eq.f32.partialorder %v809_v17, %v331_v36  ;;  %v470_v4 = vpop.permute.xlu0 %469 }
 0x241   :  { %v344_v49 = vsel %vm343_vm15, %v800_v2, 32  ;;  %v472_v7 = vsel %vm137_vm1, %v470_v4, 0.0 }
 0x242   :  { %v333_v15 = vmul.f32 1.442695, %v937_v39  ;;  %v345_v53 = vsel %vm137_vm1, %v344_v49, 2147483647 }
 0x243   :  { %379 = vadd.xlane.f32.xlu1 %v378_v42  ;;  %v347_v61 = vshra.s32 %v345_v53, 16  ;;  %v346_v36 = vand.u32 65535, %v345_v53  ;;  %v389_v42 = vand.u32 65535, %v966_v63 }
 0x244   :  { %611 = vpow2.f32 %v333_v15 }
 0x245   :  { %v349_v2 = vcvt.s32.f32 %v347_v61  ;;  %613 = vlog2.f32 %v146_v27  ;;  %v391_v49 = vcvt.s32.f32 %v389_v42 }
 0x246   :  { %615 = vrcp.f32 %v146_v27 }
 0x247   :  { %426 = vadd.xlane.f32.xlu1 %v425_v45 }
 0x24b   :  { %440 = vmin.xlane.f32.xlu1 %v951_v47 }
 0x24f   :  { %487 = vmin.xlane.f32.xlu1 %v956_v50 }
 0x251   :  { %v960_v59 = vpop.eup %611 }
 0x252   :  { %v335_v17 = vsel %vm137_vm1, %v960_v59, 0.0 }
 0x253   :  { %336 = vadd.xlane.f32.xlu0 %v335_v17  ;;  %165 = vmin.xlane.f32.xlu1 %v164_v11  ;;  %v614_v11 = vpop.eup %613 }
 0x254   :  { %v148_v13 = vmul.f32 0.6931472, %v614_v11  ;;  %v616_v19 = vpop.eup %615 }
 0x256   :  { %v149_v21 = vsub.f32 %v885_v58, %v148_v13 }
 0x257   :  { %350 = vmin.xlane.f32.xlu0 %v349_v2 }
 0x25b   :  { %393 = vmin.xlane.f32.xlu0 %v969_v3 }
 0x25f   :  { %473 = vadd.xlane.f32.xlu0 %v472_v7  ;;  %v214_v7 = vcvt.f32.s32 %v921_v12 }
 0x263   :  { %211 = vmin.xlane.f32.xlu0 %v210_v16  ;;  %v151_v16 = vmul.f32 %v616_v19, %v890_v60 }
 0x265   :  { %v174_v25 = vmul.f32 %v151_v16, %v149_v21  ;;  %v215_v16 = vshll.u32 %v214_v7, 16 }
 0x267   :  { %261 = vmin.xlane.f32.xlu0 %v260_v20  ;;  %v175_v30 = vsel %vm137_vm1, %v174_v25, 0.0 }
 0x295   :  { %v192_v9 = vpop.xlane.xlu0 %191 }
 0x296   :  { %617 = vlog2.f32 %v192_v9 }
 0x299   :  { %v973_v52 = vpop.xlane.xlu0 %241 }
 0x29d   :  { %v292_v10 = vpop.xlane.xlu0 %291 }
 0x29e   :  { %619 = vlog2.f32 %v292_v10 }
 0x29f   :  { %621 = vrcp.f32 %v192_v9 }
 0x2a3   :  { %v618_v22 = vpop.eup %617 }
 0x2a4   :  { %v194_v26 = vmul.f32 0.6931472, %v618_v22 }
 0x2a6   :  { %v195_v31 = vsub.f32 %v851_v41, %v194_v26 }
 0x2a8   :  { %v217_v32 = vsel %vm179_vm3, %v195_v31, -inf }
 0x2ab   :  { %v620_v27 = vpop.eup %619 }
 0x2ac   :  { %v294_v58 = vmul.f32 0.6931472, %v620_v27  ;;  %v622_v43 = vpop.eup %621 }
 0x2ad   :  { %v197_v53 = vmul.f32 %v622_v43, %v878_v56 }
 0x2ae   :  { %v295_v33 = vsub.f32 %v859_v46, %v294_v58  ;;  %v348_v46 = vcvt.s32.f32 %v346_v36 }
 0x2af   :  { %v220_v63 = vmul.f32 %v197_v53, %v195_v31 }
 0x2c8   :  { %v976_v23 = vpop.xlane.xlu1 %307 }
 0x2c9   :  { %vm309_vm0 = vcmp.eq.f32.partialorder %v306_v34, %v976_v23  ;;  %v317_v34 = vsel %vm279_vm4, %v295_v33, -inf }
 0x2ca   :  { %v310_v20 = vsel %vm309_vm0, %v305_v24, inf }
 0x2cb   :  { %311 = vmin.xlane.f32.xlu1 %v310_v20 }
 0x2cc   :  { %v980_v29 = vpop.xlane.xlu1 %379 }
 0x2cf   :  { %176 = vadd.xlane.f32.xlu1 %v175_v30 }
 0x2d0   :  { %v427_v60 = vpop.xlane.xlu1 %426 }
 0x2d1   :  { %623 = vlog2.f32 %v427_v60 }
 0x2d2   :  { %625 = vrcp.f32 %v292_v10 }
 0x2d3   :  { %218 = vmax.xlane.f32.xlu1 %v217_v32  ;;  %627 = vlog2.f32 %v973_v52 }
 0x2d4   :  { %629 = vrcp.f32 %v427_v60  ;;  %v988_v35 = vpop.xlane.xlu1 %440 }
 0x2d5   :  { %vm442_vm9 = vcmp.eq.f32.partialorder %v951_v47, %v988_v35 }
 0x2d7   :  { %318 = vmax.xlane.f32.xlu1 %v317_v34 }
 0x2d8   :  { %v994_v44 = vpop.xlane.xlu1 %487 }
 0x2d9   :  { %vm489_vm10 = vcmp.eq.f32.partialorder %v956_v50, %v994_v44 }
 0x2dc   :  { %v337_v41 = vpop.xlane.xlu0 %336  ;;  %v166_v9 = vpop.xlane.xlu1 %165 }
 0x2dd   :  { %631 = vlog2.f32 %v337_v41  ;;  %v167_v24 = vcvt.f32.s32 %v166_v9 }
 0x2de   :  { %633 = vrcp.f32 %v337_v41  ;;  %v624_v45 = vpop.eup %623 }
 0x2df   :  { %v626_v61 = vpop.eup %625  ;;  %v429_v17 = vmul.f32 0.6931472, %v624_v45  ;;  %635 = vrcp.f32 %v973_v52  ;;  %v436_v45 = vand.u32 65535, %v940_v40 }
 0x2e0   :  { %v990_v15 = vpop.xlane.xlu0 %350  ;;  %v628_v4 = vpop.eup %627  ;;  %v297_v56 = vmul.f32 %v626_v61, %v874_v55  ;;  %v264_v55 = vcvt.f32.s32 %v924_v18  ;;  %637 = vlog2.f32 %v980_v29 }
 0x2e1   :  { %vm352_vm5 = vcmp.eq.f32.partialorder %v349_v2, %v990_v15  ;;  %v168_v2 = vcvt.f32.s32 %v916_v8  ;;  %v630_v11 = vpop.eup %629  ;;  %v1009_v19 = vsub.f32 %v896_v62, %v429_v17  ;;  %v244_v30 = vmul.f32 0.6931472, %v628_v4 }
 0x2e2   :  { %v353_v28 = vsel %vm352_vm5, %v348_v46, inf  ;;  %v320_v14 = vmul.f32 %v297_v56, %v295_v33  ;;  %v432_v25 = vmul.f32 %v630_v11, %v907_v5  ;;  %v265_v60 = vshll.u32 %v264_v55, 16 }
 0x2e3   :  { %354 = vmin.xlane.f32.xlu0 %v353_v28  ;;  %v169_v12 = vshll.u32 %v168_v2, 16  ;;  %v245_v41 = vsub.f32 %v846_v38, %v244_v30  ;;  %v438_v38 = vcvt.s32.f32 %v436_v45 }
 0x2e4   :  { %v996_v48 = vpop.xlane.xlu0 %393  ;;  %v453_v62 = vmul.f32 %v432_v25, %v1009_v19 }
 0x2e5   :  { %vm395_vm6 = vcmp.eq.f32.partialorder %v969_v3, %v996_v48  ;;  %v171_v3 = vsel %vm137_vm1, %v149_v21, -inf  ;;  %v170_v31 = vadd.s32 %v169_v12, %v167_v24  ;;  %v267_v46 = vsel %vm229_vm2, %v245_v41, -inf }
 0x2e6   :  { %v396_v0 = vsel %vm395_vm6, %v391_v49, inf  ;;  %v483_v49 = vand.u32 65535, %v947_v37  ;;  %v443_v53 = vsel %vm442_vm9, %v438_v38, inf  ;;  %v357_v24 = vcvt.f32.s32 %v990_v15 }
 0x2e7   :  { %397 = vmin.xlane.f32.xlu0 %v396_v0 }
 0x2e8   :  { %222 = vrot.lane.b32.xlu1 %v220_v63, %s760_s6  ;;  %v1004_v10 = vpop.xlane.xlu0 %473  ;;  %v485_v52 = vcvt.s32.f32 %v483_v49  ;;  %v358_v12 = vshll.u32 %v357_v24, 16 }
 0x2e9   :  { %639 = vlog2.f32 %v1004_v10 }
 0x2ea   :  { %v632_v13 = vpop.eup %631  ;;  %641 = vrcp.f32 %v980_v29  ;;  %v314_v29 = vcvt.f32.s32 %v976_v23 }
 0x2eb   :  { %v634_v22 = vpop.eup %633  ;;  %172 = vmax.xlane.f32.xlu0 %v171_v3  ;;  %v339_v8 = vmul.f32 0.6931472, %v632_v13  ;;  %643 = vrcp.f32 %v1004_v10 }
 0x2ec   :  { %322 = vrot.lane.b32.xlu1 %v320_v14, %s758_s0  ;;  %v212_v20 = vpop.xlane.xlu0 %211  ;;  %v342_v27 = vmul.f32 %v634_v22, %v960_v59  ;;  %v636_v42 = vpop.eup %635  ;;  %v315_v56 = vshll.u32 %v314_v29, 16 }
 0x2ed   :  { %v213_v26 = vcvt.f32.s32 %v212_v20  ;;  %v340_v21 = vsub.f32 %v937_v39, %v339_v8  ;;  %v247_v43 = vmul.f32 %v636_v42, %v870_v54  ;;  %v490_v54 = vsel %vm489_vm10, %v485_v52, inf  ;;  %v638_v61 = vpop.eup %637 }
 0x2ee   :  { %v382_v40 = vmul.f32 0.6931472, %v638_v61  ;;  %v494_v42 = vcvt.f32.s32 %v994_v44 }
 0x2ef   :  { %v216_v58 = vadd.s32 %v215_v16, %v213_v26  ;;  %v360_v32 = vsel %vm137_vm1, %v340_v21, -inf  ;;  %v363_v33 = vmul.f32 %v342_v27, %v340_v21  ;;  %v270_v28 = vmul.f32 %v247_v43, %v245_v41 }
 0x2f0   :  { %455 = vrot.lane.b32.xlu1 %v453_v62, %s759_s2  ;;  %361 = vmax.xlane.f32.xlu0 %v360_v32  ;;  %v262_v5 = vpop.xlane.xlu0 %261  ;;  %v383_v17 = vsub.f32 %v864_v51, %v382_v40  ;;  %v400_v16 = vcvt.f32.s32 %v996_v48  ;;  %v447_v41 = vcvt.f32.s32 %v988_v35  ;;  %v495_v38 = vshll.u32 %v494_v42, 16 }
 0x2f1   :  { %v263_v18 = vcvt.f32.s32 %v262_v5  ;;  %v510_v34 = vsel %vm509_vm7, %v170_v31, %v216_v58  ;;  %v364_v59 = vsel %vm137_vm1, %v363_v33, 0.0 }
 0x2f2   :  { %v403_v0 = vsel %vm179_vm3, %v383_v17, -inf  ;;  %vm513_vm3 = vcmask 23552   ;;  %v401_v26 = vshll.u32 %v400_v16, 16 }
 0x2f3   :  { %v266_v39 = vadd.s32 %v265_v60, %v263_v18 }
 0x2f4   :  { %365 = vadd.xlane.f32.xlu0 %v364_v59 }
 0x2f5   :  { %v512_v36 = vsel %vm511_vm8, %v510_v34, %v266_v39 }
 0x2f6   :  { %v640_v37 = vpop.eup %639 }
 0x2f7   :  { %v642_v47 = vpop.eup %641  ;;  %v476_v63 = vmul.f32 0.6931472, %v640_v37 }
 0x2f8   :  { %268 = vmax.xlane.f32.xlu0 %v267_v46  ;;  %v385_v50 = vmul.f32 %v642_v47, %v882_v57  ;;  %v644_v4 = vpop.eup %643  ;;  %v448_v46 = vshll.u32 %v447_v41, 16 }
 0x2f9   :  { %v1041_v7 = vsub.f32 %v900_v1, %v476_v63  ;;  %v479_v51 = vmul.f32 %v644_v4, %v911_v6  ;;  %v450_v6 = vsel %vm229_vm2, %v1009_v19, -inf  ;;  %vm517_vm2 = vcmask 39936  }
 0x2fa   :  { %v406_v2 = vmul.f32 %v385_v50, %v383_v17 }
 0x2fb   :  { %v500_v9 = vmul.f32 %v479_v51, %v1041_v7  ;;  %v497_v63 = vsel %vm279_vm4, %v1041_v7, -inf }
 0x30e   :  { %272 = vrot.lane.b32.xlu0 %v270_v28, %s759_s2 }
 0x314   :  { %444 = vmin.xlane.f32.xlu1 %v443_v53 }
 0x318   :  { %491 = vmin.xlane.f32.xlu1 %v490_v54 }
 0x32d   :  { %404 = vmax.xlane.f32.xlu0 %v403_v0 }
 0x343   :  { %408 = vrot.lane.b32.xlu0 %v406_v2, %s760_s6 }
 0x347   :  { %502 = vrot.lane.b32.xlu0 %v500_v9, %s758_s0 }
 0x354   :  { %v312_v10 = vpop.xlane.xlu1 %311 }
 0x355   :  { %v313_v11 = vcvt.f32.s32 %v312_v10 }
 0x357   :  { %v316_v57 = vadd.s32 %v315_v56, %v313_v11 }
 0x358   :  { %v1048_v13 = vpop.xlane.xlu1 %176 }
 0x359   :  { %v514_v1 = vsel %vm513_vm3, %v512_v36, %v316_v57 }
 0x35c   :  { %v219_v3 = vpop.xlane.xlu1 %218 }
 0x360   :  { %v319_v14 = vpop.xlane.xlu1 %318 }
 0x364   :  { %v223_v22 = vpop.permute.xlu1 %222 }
 0x365   :  { %v225_v23 = vsel %vm137_vm1, %v223_v22, 0.0 }
 0x366   :  { %451 = vmax.xlane.f32.xlu0 %v450_v6 }
 0x368   :  { %v323_v34 = vpop.permute.xlu1 %322 }
 0x369   :  { %v325_v39 = vsel %vm137_vm1, %v323_v34, 0.0 }
 0x36a   :  { %226 = vadd.xlane.f32.xlu0 %v225_v23 }
 0x36c   :  { %v355_v8 = vpop.xlane.xlu0 %354  ;;  %v456_v59 = vpop.permute.xlu1 %455 }
 0x36d   :  { %v356_v20 = vcvt.f32.s32 %v355_v8  ;;  %v458_v37 = vsel %vm137_vm1, %v456_v59, 0.0 }
 0x36f   :  { %v359_v25 = vadd.s32 %v358_v12, %v356_v20 }
 0x370   :  { %v398_v55 = vpop.xlane.xlu0 %397 }
 0x371   :  { %v399_v21 = vcvt.f32.s32 %v398_v55  ;;  %v516_v27 = vsel %vm515_vm11, %v514_v1, %v359_v25 }
 0x373   :  { %v402_v19 = vadd.s32 %v401_v26, %v399_v21 }
 0x374   :  { %v173_v62 = vpop.xlane.xlu0 %172 }
 0x375   :  { %v526_v15 = vsel %vm509_vm7, %v173_v62, %v219_v3  ;;  %v518_v30 = vsel %vm517_vm2, %v516_v27, %v402_v19 }
 0x379   :  { %v362_v31 = vpop.xlane.xlu0 %361 }
 0x37d   :  { %v1059_v58 = vpop.xlane.xlu0 %365 }
 0x381   :  { %v269_v32 = vpop.xlane.xlu0 %268 }
 0x382   :  { %v527_v48 = vsel %vm511_vm8, %v526_v15, %v269_v32 }
 0x383   :  { %v528_v33 = vsel %vm513_vm3, %v527_v48, %v319_v14 }
 0x384   :  { %v529_v5 = vsel %vm515_vm11, %v528_v33, %v362_v31 }
 0x385   :  { %v273_v60 = vpop.permute.xlu0 %272 }
 0x386   :  { %v275_v18 = vsel %vm137_vm1, %v273_v60, 0.0 }
 0x387   :  { %276 = vadd.xlane.f32.xlu1 %v275_v18 }
 0x38b   :  { %326 = vadd.xlane.f32.xlu1 %v325_v39 }
 0x39d   :  { %v445_v36 = vpop.xlane.xlu1 %444 }
 0x39e   :  { %v446_v43 = vcvt.f32.s32 %v445_v36 }
 0x3a0   :  { %v449_v28 = vadd.s32 %v448_v46, %v446_v43 }
 0x3a1   :  { %v492_v45 = vpop.xlane.xlu1 %491 }
 0x3a2   :  { %v493_v49 = vcvt.f32.s32 %v492_v45  ;;  %v520_v53 = vsel %vm519_vm12, %v518_v30, %v449_v28 }
 0x3a4   :  { %v496_v52 = vadd.s32 %v495_v38, %v493_v49 }
 0x3a6   :  { %v522_v54 = vsel %vm521_vm13, %v520_v53, %v496_v52 }
 0x3a7   :  { %v523_v61 = vadd.s32 3, %v522_v54 }
 0x3a9   :  { %525 = vst.msk [vmem:[#allocation7] sm:$0x3] %vm524_vm14, %v523_v61 }
 0x3b6   :  { %v405_v35 = vpop.xlane.xlu0 %404 }
 0x3b7   :  { %v530_v40 = vsel %vm517_vm2, %v529_v5, %v405_v35 }
 0x3ba   :  { %v409_v44 = vpop.permute.xlu0 %408 }
 0x3bb   :  { %v411_v17 = vsel %vm137_vm1, %v409_v44, 0.0 }
 0x3bc   :  { %412 = vadd.xlane.f32.xlu0 %v411_v17 }
 0x3be   :  { %v503_v0 = vpop.permute.xlu0 %502 }
 0x3bf   :  { %v505_v47 = vsel %vm137_vm1, %v503_v0, 0.0 }
 0x3c0   :  { %459 = vadd.xlane.f32.xlu0 %v458_v37  ;;  %506 = vadd.xlane.f32.xlu1 %v505_v47 }
 0x3c4   :  { %498 = vmax.xlane.f32.xlu0 %v497_v63 }
 0x3c5   :  { %696 = shalt.err (!%p693_p0)
}
 0x3c6   :  { %551 = dma.vmem_to_hbm [thread:$0]  %s549_s8, 32, %s1102_s3, [#allocation4]   ;;  %v178_v9 = vsub.f32 0.0, %v1048_v13  ;;  %v367_v11 = vsub.f32 0.0, %v1059_v58 }
 0x3c7   :  { %s762_s3 = smov [#allocation8]   ;;  %s763_s13 = smov [#allocation10]  }
 0x3c8   :  { %s558_s12 = sshll.u32 %s762_s3, 4  ;;  %s568_s14 = sshll.u32 %s763_s13, 4  ;;  %s559_s12 = int_to_ptr.vmem [resolvable:$true] %s558_s12  ;;  %s569_s14 = int_to_ptr.vmem [resolvable:$true] %s568_s14 }
 0x3c9   :  { %s705_s15 = scalar_lea.vmem %s559_s12, 32  ;;  %p710_p2 = scmp.lt.s32.totalorder %s559_s12, %s559_s12 }
 0x3ca   :  { %p706_p1 = scmp.ne.s32.totalorder %s559_s12, %s705_s15  ;;  %p711_p3 = scmp.lt.s32.totalorder %s705_s15, %s705_s15 }
 0x3cc   :  { %p712_p4 = por %p711_p3, %p710_p2 }
 0x3ce   :  { %p713_p5 = pnand %p712_p4, %p706_p1 }
 0x3ef   :  { %v452_v50 = vpop.xlane.xlu0 %451 }
 0x3f0   :  { %v531_v16 = vsel %vm519_vm12, %v530_v40, %v452_v50 }
 0x3f3   :  { %v227_v4 = vpop.xlane.xlu0 %226 }
 0x3f4   :  { %v228_v51 = vsub.f32 0.0, %v227_v4 }
 0x3f6   :  { %v534_v10 = vsel %vm509_vm7, %v178_v9, %v228_v51 }
 0x410   :  { %v277_v2 = vpop.xlane.xlu1 %276 }
 0x411   :  { %v278_v7 = vsub.f32 0.0, %v277_v2 }
 0x413   :  { %v535_v57 = vsel %vm511_vm8, %v534_v10, %v278_v7 }
 0x414   :  { %v327_v29 = vpop.xlane.xlu1 %326 }
 0x415   :  { %v328_v56 = vsub.f32 0.0, %v327_v29 }
 0x417   :  { %v536_v1 = vsel %vm513_vm3, %v535_v57, %v328_v56 }
 0x418   :  { %v537_v3 = vsel %vm515_vm11, %v536_v1, %v367_v11 }
 0x445   :  { %v413_v14 = vpop.xlane.xlu0 %412 }
 0x446   :  { %v414_v6 = vsub.f32 0.0, %v413_v14 }
 0x448   :  { %v538_v13 = vsel %vm517_vm2, %v537_v3, %v414_v6 }
 0x449   :  { %v507_v22 = vpop.xlane.xlu1 %506  ;;  %v460_v24 = vpop.xlane.xlu0 %459 }
 0x44a   :  { %v508_v23 = vsub.f32 0.0, %v507_v22  ;;  %v461_v8 = vsub.f32 0.0, %v460_v24 }
 0x44c   :  { %v539_v12 = vsel %vm519_vm12, %v538_v13, %v461_v8 }
 0x44d   :  { %v499_v20 = vpop.xlane.xlu0 %498  ;;  %v540_v25 = vsel %vm521_vm13, %v539_v12, %v508_v23 }
 0x44e   :  { %v532_v55 = vsel %vm521_vm13, %v531_v16, %v499_v20  ;;  %541 = vst.msk [vmem:[#allocation10] sm:$0x3] %vm524_vm14, %v540_v25 }
 0x44f   :  { %533 = vst.msk [vmem:[#allocation8] sm:$0x3] %vm524_vm14, %v532_v55 }
 0x450   :  { %716 = shalt.err (!%p713_p5)
}
 0x451   :  { %561 = dma.vmem_to_hbm [thread:$0]  %s559_s12, 32, %s1103_s4, [#allocation9]  }
 0x452   :  { %s725_s18 = scalar_lea.vmem %s569_s14, 32  ;;  %p730_p7 = scmp.lt.s32.totalorder %s569_s14, %s569_s14 }
 0x453   :  { %p726_p6 = scmp.ne.s32.totalorder %s569_s14, %s725_s18  ;;  %p731_p8 = scmp.lt.s32.totalorder %s725_s18, %s725_s18 }
 0x455   :  { %p732_p9 = por %p731_p8, %p730_p7 }
 0x457   :  { %p733_p10 = pnand %p732_p9, %p726_p6 }
 0x459   :  { %736 = shalt.err (!%p733_p10)
}
 0x45a   :  { %571 = dma.vmem_to_hbm [thread:$0]  %s569_s14, 32, %s1104_s5, [#allocation9]  }
 0x45b   :  { %749 = dma.done.wait [#allocation4], 32  }
 0x45c   :  { %750 = vsyncadd [#allocation4], 4294967264 }
 0x45d   :  { %751 = dma.done.wait [#allocation9], 64  }
 0x45e   :  { %752 = vsyncadd [#allocation9], 4294967232 }
 0x45f   :  { %581 = vsyncpa [#allocation3], 1 }
 0x460   :  { %582 = vsyncpa [#allocation6], 1 }
 0x461   :  { %583 = vsyncpa [#allocation4], 1 }
 0x462   :  { %584 = vsyncpa [#allocation9], 1 }

</bundles_post_ra>
